<compile_context>
chip_gen: v5e
topology: v5e:2x2
jax: 0.10.0
libtpu: 0.0.40
codegen_flags: <defaults>
</compile_context>

<pallas_src>
import functools

import jax
import jax.numpy as jnp
from jax.experimental import pallas as pl
from jax.experimental.pallas import tpu as pltpu

_NEG_PAD = -1e30  # lane-padding value: exp(pad - max) underflows to exactly 0.0


def _round_up(x, m):
    return ((x + m - 1) // m) * m


# ---------------------------------------------------------------------------
# Kernels
# ---------------------------------------------------------------------------
def _bigram_loss_kernel(idx_ref, tgt_ref, table_ref, logits_ref, loss_ref, *,
                        n_valid, tile_n, table_rows):
    # idx_ref, tgt_ref: (TILE_N, 1) int32 VMEM blocks
    # table_ref:        (Vr, Vp) f32 VMEM-resident padded embedding table
    # logits_ref:       (TILE_N, Vp) f32 output block
    # loss_ref:         (TILE_N, 1) f32 per-row cross entropy (0 for padded rows)
    ids = idx_ref[...]                                                 # (TILE_N, 1)
    row_iota = jax.lax.broadcasted_iota(jnp.int32, (tile_n, table_rows), 1)
    onehot = (row_iota == ids).astype(jnp.float32)                     # (TILE_N, Vr)

    # Exact gather: one-hot @ table on the MXU with highest precision.
    logits = jax.lax.dot_general(
        onehot, table_ref[...],
        dimension_numbers=(((1,), (0,)), ((), ())),
        precision=jax.lax.Precision.HIGHEST,
        preferred_element_type=jnp.float32)                            # (TILE_N, Vp)
    logits_ref[...] = logits

    # Per-row cross entropy: logsumexp(row) - row[target], whole-tile ops.
    tgt = tgt_ref[...]                                                 # (TILE_N, 1)
    lane = jax.lax.broadcasted_iota(jnp.int32, logits.shape, 1)        # (TILE_N, Vp)
    tgt_logit = jnp.sum(jnp.where(lane == tgt, logits, 0.0),
                        axis=-1, keepdims=True)                        # (TILE_N, 1)
    m = jnp.max(logits, axis=-1, keepdims=True)
    lse = m + jnp.log(jnp.sum(jnp.exp(logits - m), axis=-1, keepdims=True))
    ce = lse - tgt_logit                                               # (TILE_N, 1)

    # Mask padded rows (global row index >= n_valid) so the wrapper sum is exact.
    gr = (pl.program_id(0) * tile_n
          + jax.lax.broadcasted_iota(jnp.int32, (tile_n, 1), 0))
    loss_ref[...] = jnp.where(gr < n_valid, ce, 0.0)


def _bigram_gather_kernel(idx_ref, table_ref, logits_ref, *, tile_n, table_rows):
    # Inference path: pure batched embedding gather, no loss work.
    ids = idx_ref[...]
    row_iota = jax.lax.broadcasted_iota(jnp.int32, (tile_n, table_rows), 1)
    onehot = (row_iota == ids).astype(jnp.float32)
    logits_ref[...] = jax.lax.dot_general(
        onehot, table_ref[...],
        dimension_numbers=(((1,), (0,)), ((), ())),
        precision=jax.lax.Precision.HIGHEST,
        preferred_element_type=jnp.float32)


# ---------------------------------------------------------------------------
# pallas_call builders
# ---------------------------------------------------------------------------
def _compiler_params(table_bytes, tile_bytes):
    # Table (resident) + a few double-buffered (TILE_N, Vp) blocks + margin,
    # clamped to the v7x per-TC physical VMEM of 64 MiB.
    needed = table_bytes + 6 * tile_bytes + (1 << 20)
    limit = min(64 * 1024 * 1024, max(32 * 1024 * 1024, needed))
    return pltpu.CompilerParams(dimension_semantics=("parallel",),
                                vmem_limit_bytes=limit)


def _make_loss_call(Np, tile_n, Vr, Vp, n_valid):
    kernel = functools.partial(_bigram_loss_kernel, n_valid=n_valid,
                               tile_n=tile_n, table_rows=Vr)
    grid_spec = pltpu.PrefetchScalarGridSpec(
        num_scalar_prefetch=0,
        grid=(Np // tile_n,),
        in_specs=[
            pl.BlockSpec((tile_n, 1), lambda i: (i, 0)),   # idx tile
            pl.BlockSpec((tile_n, 1), lambda i: (i, 0)),   # target tile
            pl.BlockSpec((Vr, Vp), lambda i: (0, 0)),      # table: VMEM-resident
        ],
        out_specs=(
            pl.BlockSpec((tile_n, Vp), lambda i: (i, 0)),  # logits (lane-dense)
            pl.BlockSpec((tile_n, 1), lambda i: (i, 0)),   # per-row CE
        ),
    )
    return pl.pallas_call(
        kernel,
        out_shape=(jax.ShapeDtypeStruct((Np, Vp), jnp.float32),
                   jax.ShapeDtypeStruct((Np, 1), jnp.float32)),
        grid_spec=grid_spec,
        compiler_params=_compiler_params(Vr * Vp * 4, tile_n * Vp * 4),
    )


def _make_gather_call(Np, tile_n, Vr, Vp):
    kernel = functools.partial(_bigram_gather_kernel, tile_n=tile_n, table_rows=Vr)
    grid_spec = pltpu.PrefetchScalarGridSpec(
        num_scalar_prefetch=0,
        grid=(Np // tile_n,),
        in_specs=[
            pl.BlockSpec((tile_n, 1), lambda i: (i, 0)),   # idx tile
            pl.BlockSpec((Vr, Vp), lambda i: (0, 0)),      # table: VMEM-resident
        ],
        out_specs=pl.BlockSpec((tile_n, Vp), lambda i: (i, 0)),
    )
    return pl.pallas_call(
        kernel,
        out_shape=jax.ShapeDtypeStruct((Np, Vp), jnp.float32),
        grid_spec=grid_spec,
        compiler_params=_compiler_params(Vr * Vp * 4, tile_n * Vp * 4),
    )


# ---------------------------------------------------------------------------
# Wrapper (mirror of BigramLM.forward)
# ---------------------------------------------------------------------------
def pad_embedding_table(table):
    """One-time prep (hoisted out of forward): cast to f32, pad rows to a
    multiple of 8 (never selected) and lanes to a multiple of 128 with -1e30."""
    V, C = table.shape
    assert C == V
    Vr = _round_up(V, 8)
    Vp = _round_up(V, 128)
    emb = table.astype(jnp.float32)
    if Vp != V:
        emb = jnp.concatenate(
            [emb, jnp.full((V, Vp - V), _NEG_PAD, jnp.float32)], axis=1)
    if Vr != V:
        emb = jnp.concatenate([emb, jnp.zeros((Vr - V, Vp), jnp.float32)], axis=0)
    return emb


def bigram_forward(idx, table_padded, vocab_size, targets=None):
    """Mirror of BigramLM.forward.

    idx: (B, T) int32; table_padded: output of pad_embedding_table (Vr, Vp) f32.
      - targets is None -> (logits (B, T, V), None)
      - else            -> (logits (B*T, V),  scalar mean cross-entropy)
    """
    B, T = idx.shape
    V = vocab_size
    Vr, Vp = table_padded.shape
    N = B * T

    # 128-256 rows per grid step (full MXU / dense (8,128) store tiles).
    tile_n = min(256, _round_up(N, 8))
    Np = _round_up(N, tile_n)

    idx_flat = idx.reshape(N).astype(jnp.int32)
    if Np != N:
        idx_flat = jnp.pad(idx_flat, (0, Np - N))
    idx_col = idx_flat.reshape(Np, 1)

    if targets is None:
        logits_pad = _make_gather_call(Np, tile_n, Vr, Vp)(idx_col, table_padded)
        logits = logits_pad[:N, :V]
        return logits.reshape(B, T, V), None

    tgt_flat = targets.reshape(N).astype(jnp.int32)
    if Np != N:
        tgt_flat = jnp.pad(tgt_flat, (0, Np - N))
    tgt_col = tgt_flat.reshape(Np, 1)

    logits_pad, ce_rows = _make_loss_call(Np, tile_n, Vr, Vp, N)(
        idx_col, tgt_col, table_padded)
    logits = logits_pad[:N, :V]
    loss = jnp.sum(ce_rows) / N          # padded rows contribute exactly 0
    return logits, loss


if __name__ == "__main__":
    key = jax.random.PRNGKey(0)
    k_emb, k_idx, k_tgt = jax.random.split(key, 3)

    vocab_size = 32   # synthetic char vocab
    B, T = 2, 8

    # Deterministic parameter init (nn.Embedding(vocab_size, vocab_size) ~ N(0,1)).
    embedding_table = jax.random.normal(k_emb, (vocab_size, vocab_size),
                                        dtype=jnp.float32)
    idx = jax.random.randint(k_idx, (B, T), 0, vocab_size, dtype=jnp.int32)
    targets = jax.random.randint(k_tgt, (B, T), 0, vocab_size, dtype=jnp.int32)

    # One-time table prep (hoisted out of the forward pass).
    table_padded = pad_embedding_table(embedding_table)

    # Path with targets: logits (B*T, V), scalar mean cross-entropy loss.
    logits, loss = bigram_forward(idx, table_padded, vocab_size, targets)
    jax.block_until_ready((logits, loss))

    # Path without targets: logits (B, T, V), loss None, no loss compute at all.
    logits_nt, loss_nt = bigram_forward(idx, table_padded, vocab_size, None)
    jax.block_until_ready(logits_nt)

    # Reference check in plain JAX.
    ref_logits = embedding_table[idx.reshape(-1)]
    ref_lse = jax.nn.logsumexp(ref_logits, axis=-1)
    ref_tgt = jnp.take_along_axis(ref_logits, targets.reshape(-1, 1), axis=-1)[:, 0]
    ref_loss = jnp.mean(ref_lse - ref_tgt)

    assert logits.shape == (B * T, vocab_size)
    assert logits_nt.shape == (B, T, vocab_size)
    assert loss_nt is None
    assert jnp.allclose(logits, ref_logits, atol=1e-5)
    assert jnp.allclose(logits_nt.reshape(B * T, vocab_size), ref_logits, atol=1e-5)
    assert jnp.allclose(loss, ref_loss, atol=1e-5)

    print("KERNEL_OK")
</pallas_src>

<mosaic_0001>
module attributes {stable_mosaic.version = 11 : i64} {
  func.func @_bigram_loss_kernel(%arg0: i32, %arg1: memref<16x1xi32, #tpu.memory_space<vmem>>, %arg2: memref<16x1xi32, #tpu.memory_space<vmem>>, %arg3: memref<32x128xf32, #tpu.memory_space<vmem>>, %arg4: memref<16x128xf32, #tpu.memory_space<vmem>>, %arg5: memref<16x1xf32, #tpu.memory_space<vmem>>) attributes {dimension_semantics = [#tpu.dimension_semantics<parallel>], iteration_bounds = array<i64: 1>, scalar_prefetch = 0 : i64, scratch_operands = 0 : i64, tpu.core_type = #tpu.core_type<tc>, window_params = [{transform_indices = @transform_0, window_bounds = array<i64: 16, 1>}, {transform_indices = @transform_1, window_bounds = array<i64: 16, 1>}, {pipeline_mode = #tpu.pipeline_mode<synchronous>, transform_indices = @transform_2, window_bounds = array<i64: 32, 128>}, {transform_indices = @transform_3, window_bounds = array<i64: 16, 128>}, {transform_indices = @transform_4, window_bounds = array<i64: 16, 1>}]} {
    %c0 = arith.constant 0 : index
    %c0_0 = arith.constant 0 : index
    %0 = vector.load %arg1[%c0, %c0_0] : memref<16x1xi32, #tpu.memory_space<vmem>>, vector<16x1xi32>
    %1 = tpu.iota {dimensions = array<i32: 1>} : vector<16x32xi32>
    %2 = vector.broadcast %0 : vector<16x1xi32> to vector<16x32xi32>
    %3 = arith.cmpi eq, %1, %2 : vector<16x32xi32>
    %4 = arith.extui %3 : vector<16x32xi1> to vector<16x32xi32>
    %5 = arith.sitofp %4 : vector<16x32xi32> to vector<16x32xf32>
    %c0_1 = arith.constant 0 : index
    %c0_2 = arith.constant 0 : index
    %6 = vector.load %arg3[%c0_1, %c0_2] : memref<32x128xf32, #tpu.memory_space<vmem>>, vector<32x128xf32>
    %cst = arith.constant dense<0.000000e+00> : vector<16x128xf32>
    %7 = tpu.matmul %5, %6, %cst {dimension_numbers = #tpu.dot_dimension_numbers<[1], [0], [0], [1], [0, 0, 1, 1], [], []>, precision = #tpu.contract_precision<fp32>} : vector<16x32xf32>, vector<32x128xf32>, vector<16x128xf32> -> vector<16x128xf32>
    %c0_3 = arith.constant 0 : index
    %c0_4 = arith.constant 0 : index
    %8 = vector.load %arg4[%c0_3, %c0_4] : memref<16x128xf32, #tpu.memory_space<vmem>>, vector<16x128xf32>
    tpu.vector_store %arg4[%c0_3, %c0_4], %7 {strides = array<i32>} : memref<16x128xf32, #tpu.memory_space<vmem>>, vector<16x128xf32>,
    %c0_5 = arith.constant 0 : index
    %c0_6 = arith.constant 0 : index
    %9 = vector.load %arg2[%c0_5, %c0_6] : memref<16x1xi32, #tpu.memory_space<vmem>>, vector<16x1xi32>
    %10 = tpu.iota {dimensions = array<i32: 1>} : vector<16x128xi32>
    %11 = vector.broadcast %9 : vector<16x1xi32> to vector<16x128xi32>
    %12 = arith.cmpi eq, %10, %11 : vector<16x128xi32>
    %cst_7 = arith.constant 0.000000e+00 : f32
    %13 = vector.broadcast %cst_7 : f32 to vector<16x128xf32>
    %14 = arith.select %12, %7, %13 : vector<16x128xi1>, vector<16x128xf32>
    %cst_8 = arith.constant dense<0.000000e+00> : vector<16xf32>
    %15 = vector.multi_reduction <add>, %14, %cst_8 [1] : vector<16x128xf32> to vector<16xf32>
    %16 = vector.shape_cast %15 : vector<16xf32> to vector<16x1xf32>
    %cst_9 = arith.constant dense<0xFF800000> : vector<16xf32>
    %17 = vector.multi_reduction <maximumf>, %7, %cst_9 [1] : vector<16x128xf32> to vector<16xf32>
    %18 = vector.shape_cast %17 : vector<16xf32> to vector<16x1xf32>
    %19 = vector.broadcast %18 : vector<16x1xf32> to vector<16x128xf32>
    %20 = arith.subf %7, %19 : vector<16x128xf32>
    %21 = math.exp %20 : vector<16x128xf32>
    %cst_10 = arith.constant dense<0.000000e+00> : vector<16xf32>
    %22 = vector.multi_reduction <add>, %21, %cst_10 [1] : vector<16x128xf32> to vector<16xf32>
    %23 = vector.shape_cast %22 : vector<16xf32> to vector<16x1xf32>
    %24 = math.log %23 : vector<16x1xf32>
    %25 = arith.addf %18, %24 : vector<16x1xf32>
    %26 = arith.subf %25, %16 : vector<16x1xf32>
    %c16_i32 = arith.constant 16 : i32
    %27 = arith.muli %arg0, %c16_i32 : i32
    %28 = tpu.iota {dimensions = array<i32: 0>} : vector<16x1xi32>
    %29 = vector.broadcast %27 : i32 to vector<16x1xi32>
    %30 = arith.addi %29, %28 : vector<16x1xi32>
    %c16_i32_11 = arith.constant 16 : i32
    %31 = vector.broadcast %c16_i32_11 : i32 to vector<16x1xi32>
    %32 = arith.cmpi slt, %30, %31 : vector<16x1xi32>
    %cst_12 = arith.constant 0.000000e+00 : f32
    %33 = vector.broadcast %cst_12 : f32 to vector<16x1xf32>
    %34 = arith.select %32, %26, %33 : vector<16x1xi1>, vector<16x1xf32>
    %c0_13 = arith.constant 0 : index
    %c0_14 = arith.constant 0 : index
    %35 = vector.load %arg5[%c0_13, %c0_14] : memref<16x1xf32, #tpu.memory_space<vmem>>, vector<16x1xf32>
    tpu.vector_store %arg5[%c0_13, %c0_14], %34 {strides = array<i32>} : memref<16x1xf32, #tpu.memory_space<vmem>>, vector<16x1xf32>,
    return
  }
  func.func @transform_0(%arg0: i32) -> (i32, i32) {
    %c0_i32 = arith.constant 0 : i32
    %c0_i32_0 = arith.constant 0 : i32
    return %arg0, %c0_i32 : i32, i32
  }
  func.func @transform_1(%arg0: i32) -> (i32, i32) {
    %c0_i32 = arith.constant 0 : i32
    %c0_i32_0 = arith.constant 0 : i32
    return %arg0, %c0_i32 : i32, i32
  }
  func.func @transform_2(%arg0: i32) -> (i32, i32) {
    %c0_i32 = arith.constant 0 : i32
    %c0_i32_0 = arith.constant 0 : i32
    %c0_i32_1 = arith.constant 0 : i32
    return %c0_i32, %c0_i32_0 : i32, i32
  }
  func.func @transform_3(%arg0: i32) -> (i32, i32) {
    %c0_i32 = arith.constant 0 : i32
    %c0_i32_0 = arith.constant 0 : i32
    return %arg0, %c0_i32 : i32, i32
  }
  func.func @transform_4(%arg0: i32) -> (i32, i32) {
    %c0_i32 = arith.constant 0 : i32
    %c0_i32_0 = arith.constant 0 : i32
    return %arg0, %c0_i32 : i32, i32
  }
}

</mosaic_0001>

<bundles_post_ra>
// kernel: tpu_custom_call.1
= control target key start
LH: loop header
LB: loop body
LE: loop exit
PB: predicated region body
PF: predicated region fallthrough
CT: control target
= control target key end

     0   :  { %v393_v2 = vmov 0   ;;  %s470_s0 = inlined_call_operand.vmem [shape: s32[16,1], index: 0, kind: input, shape index: {}]   ;;  %s471_s1 = inlined_call_operand.vmem [shape: s32[16,1], index: 1, kind: input, shape index: {}]   ;;  %s472_s2 = inlined_call_operand.vmem [shape: f32[32,128], index: 2, kind: input, shape index: {}]   ;;  %s473_s3 = inlined_call_operand.hbm [shape: f32[16,128], index: 3, kind: output, shape index: {0}]   ;;  %s474_s4 = inlined_call_operand.vmem [shape: f32[16,1], index: 4, kind: output, shape index: {1}]  }
   0x1   :  { %v18_v0 = vld [vmem:[%s470_s0 + $0x8] sm:$0xff]  ;;  %v36_v1 = vld [vmem:[%s472_s2 + $0x18] sm:$0xff]  ;;  %357 = vset.pattern.permute.xlu0 %v393_v2  ;;  %v35_v4 = vld [vmem:[%s472_s2 + $0x10] sm:$0xff]  ;;  %358 = vset.pattern.permute.xlu2 %v393_v2 }
   0x2   :  { %v56_v3 = vand.u32 4294901760, %v36_v1  ;;  %v34_v5 = vld [vmem:[%s472_s2 + $0x8] sm:$0xff] }
   0x3   :  { %10 = vsyncpa [#allocation3], 0  ;;  %25 = vperm.xlu0 %357, %v18_v0   ;;  %v58_v6 = vand.u32 4294901760, %v35_v4  ;;  %v60_v7 = vand.u32 4294901760, %v34_v5  ;;  %v17_v14 = vld [vmem:[%s470_s0] sm:$0xff]  ;;  %v19_v27 = vlaneseq  ;;  %vm37_vm0 = vcmask 261120  }
   0x4   :  { %v94_v8 = vsub.f32 %v36_v1, %v56_v3  ;;  %344 = vmatpush.msra.mxu2 %v56_v3  ;;  %57 = vmatpush.msra.mxu0 %v56_v3  ;;  %v33_v21 = vld [vmem:[%s472_s2] sm:$0xff]  ;;  %v394_v30 = vmov 0.0   ;;  %v263_v40 = vld [vmem:[%s471_s1 + $0x8] sm:$0xff]  ;;  %s320_s6 = sshll.u32 %s473_s3, 4  ;;  %s396_s7 = smov 128   ;;  %vm311_vm5 = vcmask 7168   ;;  %s321_s6 = int_to_ptr.hbm [resolvable:$true] %s320_s6 }
   0x5   :  { %v100_v9 = vsub.f32 %v35_v4, %v58_v6  ;;  %v106_v10 = vsub.f32 %v34_v5, %v60_v7  ;;  %v62_v22 = vand.u32 4294901760, %v33_v21  ;;  %v441_v28 = vand.u32 127, %v19_v27  ;;  %v262_v34 = vld [vmem:[%s471_s1] sm:$0xff]  ;;  %s395_s1 = smov [#allocation2]   ;;  %s397_s8 = smov 8  }
   0x6   :  { %v95_v11 = vand.u32 4294901760, %v94_v8  ;;  %345 = vmatpush.msra.mxu2 %v58_v6  ;;  %59 = vmatpush.msra.mxu0 %v58_v6  ;;  %s318_s29 = sshll.u32 %s395_s1, 4  ;;  %s319_s29 = int_to_ptr.vmem [resolvable:$true] %s318_s29 }
   0x7   :  { %v101_v12 = vand.u32 4294901760, %v100_v9  ;;  %v107_v13 = vand.u32 4294901760, %v106_v10  ;;  %v112_v23 = vsub.f32 %v33_v21, %v62_v22  ;;  %265 = vperm.xlu2 %358, %v262_v34  }
   0x8   :  { %v96_v15 = vsub.f32 %v94_v8, %v95_v11  ;;  %346 = vmatpush.msra.mxu2 %v60_v7  ;;  %61 = vmatpush.msra.mxu0 %v60_v7 }
   0x9   :  { %v102_v16 = vsub.f32 %v100_v9, %v101_v12  ;;  %v108_v17 = vsub.f32 %v106_v10, %v107_v13  ;;  %v113_v24 = vand.u32 4294901760, %v112_v23 }
   0xa   :  { %v97_v18 = vand.u32 4294901760, %v96_v15  ;;  %347 = vmatpush.msra.mxu2 %v62_v22  ;;  %63 = vmatpush.msra.mxu0 %v62_v22 }
   0xb   :  { %22 = vperm.xlu0 %357, %v17_v14   ;;  %v103_v19 = vand.u32 4294901760, %v102_v16  ;;  %v109_v20 = vand.u32 4294901760, %v108_v17  ;;  %v114_v25 = vsub.f32 %v112_v23, %v113_v24 }
   0xc   :  { %348 = vmatpush.msra.mxu3 %v97_v18  ;;  %98 = vmatpush.msra.mxu1 %v97_v18 }
   0xd   :  { %140 = vmatpush.msrb.mxu2 %v94_v8  ;;  %209 = vmatpush.msrb.mxu0 %v95_v11  ;;  %v115_v26 = vand.u32 4294901760, %v114_v25 }
   0xe   :  { %349 = vmatpush.msra.mxu3 %v103_v19  ;;  %104 = vmatpush.msra.mxu1 %v103_v19 }
   0xf   :  { %143 = vmatpush.msrb.mxu2 %v100_v9  ;;  %213 = vmatpush.msrb.mxu0 %v101_v12 }
  0x10   :  { %350 = vmatpush.msra.mxu3 %v109_v20  ;;  %110 = vmatpush.msra.mxu1 %v109_v20 }
  0x11   :  { %146 = vmatpush.msrb.mxu2 %v106_v10  ;;  %217 = vmatpush.msrb.mxu0 %v107_v13 }
  0x12   :  { %351 = vmatpush.msra.mxu3 %v115_v26  ;;  %116 = vmatpush.msra.mxu1 %v115_v26 }
  0x13   :  { %149 = vmatpush.msrb.mxu2 %v112_v23  ;;  %221 = vmatpush.msrb.mxu0 %v113_v24 }
  0x14   :  { %174 = vmatpush.msrb.mxu3 %v56_v3  ;;  %244 = vmatpush.msrb.mxu1 %v56_v3 }
  0x15   :  { %268 = vperm.xlu2 %358, %v263_v40  }
  0x16   :  { %176 = vmatpush.msrb.mxu3 %v58_v6  ;;  %246 = vmatpush.msrb.mxu1 %v58_v6 }
  0x18   :  { %178 = vmatpush.msrb.mxu3 %v60_v7  ;;  %248 = vmatpush.msrb.mxu1 %v60_v7 }
  0x1a   :  { %180 = vmatpush.msrb.mxu3 %v62_v22  ;;  %250 = vmatpush.msrb.mxu1 %v62_v22 }
  0x61   :  { %v266_v56 = vpop.permute.xlu2 %265 }
  0x62   :  { %vm270_vm3 = vcmp.eq.s32.totalorder %v441_v28, %v266_v56 }
  0x6f   :  { %v269_v14 = vpop.permute.xlu2 %268 }
  0x70   :  { %vm271_vm4 = vcmp.eq.s32.totalorder %v441_v28, %v269_v14 }
  0x75   :  { %v26_v29 = vpop.permute.xlu0 %25 }
  0x76   :  { %vm28_vm1 = vcmp.eq.s32.totalorder %v441_v28, %v26_v29 }
  0x77   :  { %v337_v31 = vsel %vm28_vm1, 1.0, %v394_v30 }
  0x78   :  { %v42_v32 = vsel %vm37_vm0, %v337_v31, 0  ;;  %339 = vmatmul.msk.f32.vlgmr.msra.gmra.mxu3 %vm37_vm0, %v337_v31 }
  0x79   :  { %v73_v33 = vsub.f32 %v42_v32, %v42_v32 }
  0x7b   :  { %v74_v35 = vand.u32 4294901760, %v73_v33 }
  0x7d   :  { %v23_v36 = vpop.permute.xlu0 %22  ;;  %v75_v37 = vsub.f32 %v73_v33, %v74_v35 }
  0x7e   :  { %vm27_vm2 = vcmp.eq.s32.totalorder %v441_v28, %v23_v36 }
  0x7f   :  { %v336_v38 = vsel %vm27_vm2, 1.0, %v394_v30  ;;  %v76_v39 = vand.u32 4294901760, %v75_v37 }
  0x80   :  { %v39_v41 = vsel %vm37_vm0, %v336_v38, 0  ;;  %338 = vmatmul.msk.f32.vlgmr.msra.gmra.mxu1 %vm37_vm0, %v336_v38 }
  0x81   :  { %v65_v42 = vsub.f32 %v39_v41, %v39_v41  ;;  %77 = vmatmul.f32.vlgmr.msra.gmra.mxu2 %v76_v39 }
  0x83   :  { %v66_v43 = vand.u32 4294901760, %v65_v42 }
  0x85   :  { %184 = vmatmul.f32.vlgmr.msrb.gmra.mxu3 %v66_v43  ;;  %v67_v44 = vsub.f32 %v65_v42, %v66_v43 }
  0x87   :  { %v68_v45 = vand.u32 4294901760, %v67_v44 }
  0x88   :  { %342 = vmatmul.msk.f32.vlgmr.msrb.gmra.mxu1 %vm37_vm0, %v336_v38 }
  0x89   :  { %69 = vmatmul.f32.vlgmr.msra.gmra.mxu0 %v68_v45  ;;  %152 = vmatmul.f32.vlgmr.msrb.gmra.mxu2 %v65_v42 }
  0x8d   :  { %190 = vmatmul.f32.gmra.mxu3 %v74_v35 }
  0x90   :  { %343 = vmatmul.msk.f32.gmra.mxu1 %vm37_vm0, %v337_v31 }
  0x91   :  { %157 = vmatmul.f32.gmra.mxu2 %v73_v33  ;;  %340 = vmatmul.msk.f32.vlgmr.msrb.gmra.mxu0 %vm37_vm0, %v336_v38 }
  0x99   :  { %341 = vmatmul.msk.f32.gmra.mxu0 %vm37_vm0, %v337_v31 }
  0xfb   :  { %v123_v46 = vpop.f32.mrf.mxu3 }
  0xfd   :  { %v119_v48 = vpop.f32.mrf.mxu1 }
 0x104   :  { %v78_v47 = vpop.f32.mrf.mxu2 }
 0x105   :  { %v253_v57 = vpop.f32.mrf.mxu1  ;;  %v124_v59 = vadd.f32 %v123_v46, %v78_v47 }
 0x106   :  { %v70_v49 = vpop.f32.mrf.mxu0 }
 0x107   :  { %v120_v50 = vadd.f32 %v119_v48, %v70_v49 }
 0x108   :  { %v185_v51 = vpop.f32.mrf.mxu3 }
 0x10c   :  { %v153_v52 = vpop.f32.mrf.mxu2 }
 0x10d   :  { %v154_v53 = vadd.f32 %v153_v52, %v120_v50  ;;  %v257_v4 = vpop.f32.mrf.mxu1 }
 0x10e   :  { %v224_v54 = vpop.f32.mrf.mxu0 }
 0x10f   :  { %v186_v55 = vadd.f32 %v185_v51, %v154_v53 }
 0x110   :  { %v191_v0 = vpop.f32.mrf.mxu3 }
 0x111   :  { %v225_v58 = vadd.f32 %v224_v54, %v186_v55 }
 0x113   :  { %v254_v60 = vadd.f32 %v253_v57, %v225_v58 }
 0x114   :  { %v158_v61 = vpop.f32.mrf.mxu2 }
 0x115   :  { %260 = vst [vmem:[#allocation2] sm:$0xff] %v254_v60  ;;  %v159_v62 = vadd.f32 %v158_v61, %v124_v59  ;;  %278 = vmax.xlane.f32.xlu1 %v254_v60  ;;  %v272_v63 = vsel %vm270_vm3, %v254_v60, 0.0 }
 0x116   :  { %274 = vadd.xlane.f32.xlu2 %v272_v63  ;;  %v228_v2 = vpop.f32.mrf.mxu0 }
 0x117   :  { %v192_v1 = vadd.f32 %v191_v0, %v159_v62 }
 0x119   :  { %v229_v3 = vadd.f32 %v228_v2, %v192_v1 }
 0x11b   :  { %v258_v5 = vadd.f32 %v257_v4, %v229_v3 }
 0x11d   :  { %261 = vst [vmem:[#allocation2 + $0x8] sm:$0xff] %v258_v5  ;;  %280 = vmax.xlane.f32.xlu1 %v258_v5  ;;  %v273_v15 = vsel %vm271_vm4, %v258_v5, 0.0 }
 0x11e   :  { %326 = dma.vmem_to_hbm [thread:$0]  %s319_s29, 256, %s321_s6, [#allocation3], %s396_s7, %s396_s7, %s397_s8  }
 0x188   :  { %v279_v6 = vpop.xlane.xlu1 %278 }
 0x189   :  { %v282_v7 = vsub.f32 %v254_v60, %v279_v6  ;;  %v275_v21 = vpop.xlane.xlu2 %274 }
 0x18b   :  { %v284_v8 = vmul.f32 1.442695, %v282_v7 }
 0x18d   :  { %359 = vpow2.f32 %v284_v8 }
 0x190   :  { %v281_v9 = vpop.xlane.xlu1 %280 }
 0x191   :  { %v283_v10 = vsub.f32 %v258_v5, %v281_v9 }
 0x193   :  { %v360_v11 = vpop.eup %359  ;;  %v286_v12 = vmul.f32 1.442695, %v283_v10 }
 0x194   :  { %288 = vadd.xlane.f32.xlu0 %v360_v11 }
 0x195   :  { %361 = vpow2.f32 %v286_v12 }
 0x19b   :  { %v362_v13 = vpop.eup %361 }
 0x19c   :  { %290 = vadd.xlane.f32.xlu1 %v362_v13 }
 0x1a4   :  { %276 = vadd.xlane.f32.xlu1 %v273_v15 }
 0x207   :  { %v289_v16 = vpop.xlane.xlu0 %288 }
 0x208   :  { %363 = vlog2.f32 %v289_v16 }
 0x20e   :  { %v364_v17 = vpop.eup %363 }
 0x20f   :  { %v293_v18 = vmul.f32 0.6931472, %v364_v17  ;;  %v291_v19 = vpop.xlane.xlu1 %290 }
 0x210   :  { %365 = vlog2.f32 %v291_v19 }
 0x211   :  { %v296_v20 = vadd.f32 %v293_v18, %v279_v6 }
 0x213   :  { %v298_v22 = vsub.f32 %v296_v20, %v275_v21 }
 0x215   :  { %312 = vst.msk [vmem:[%s474_s4] sm:$0xff] %vm311_vm5, %v298_v22 }
 0x216   :  { %v366_v23 = vpop.eup %365 }
 0x217   :  { %v295_v24 = vmul.f32 0.6931472, %v366_v23  ;;  %v277_v26 = vpop.xlane.xlu1 %276 }
 0x219   :  { %v297_v25 = vadd.f32 %v295_v24, %v281_v9 }
 0x21b   :  { %v299_v27 = vsub.f32 %v297_v25, %v277_v26 }
 0x21d   :  { %313 = vst.msk [vmem:[%s474_s4 + $0x8] sm:$0xff] %vm311_vm5, %v299_v27 }
 0x21e   :  { %391 = dma.done.wait [#allocation3], 256  }
 0x21f   :  { %392 = vsyncadd [#allocation3], 4294967040 }
 0x220   :  { %335 = vsyncpa [#allocation3], 1 }

</bundles_post_ra>
